<compile_context>
chip_gen: v6e
topology: v6e:2x2x1
jax: 0.10.0
libtpu: 0.0.40
codegen_flags: <defaults>
</compile_context>

<pallas_src>
import functools

import jax
import jax.numpy as jnp
from jax.experimental import pallas as pl
from jax.experimental.pallas import tpu as pltpu


def _round_up(x, m):
    return (x + m - 1) // m * m


# ----------------------------------------------------------------------------
# Kernel: sum over (conv, kh, kw) taps of shifted channel-contraction matmuls.
#   grid = (batch, C-blocks);  acc (Cout, rows) persists across the C axis.
# ----------------------------------------------------------------------------
def _fused_dilated_conv_kernel(x_ref, w_ref, b_ref, o_ref, acc_ref, *, shifts):
    # x_ref:   (1, tc, rflat) f32  raw padded input rows (flat H*W), channel block c
    # w_ref:   (T, Cout, tc)  f32  per-tap weight slices, channel block c
    # b_ref:   (Cout, 1)      f32  combined bias of the three convs
    # o_ref:   (1, Cout, rout) f32 channels-first output tile (lane-dense flat rows)
    # acc_ref: (Cout, rout)   f32  accumulator across the contraction grid axis
    c = pl.program_id(1)
    rout = acc_ref.shape[1]

    @pl.when(c == 0)
    def _init():
        acc_ref[...] = jnp.zeros_like(acc_ref)

    x = x_ref[0]                                   # (tc, rflat)
    acc = jnp.zeros(acc_ref.shape, jnp.float32)
    for t, shift in enumerate(shifts):             # static unrolled tap loop (3*kh*kw taps)
        slab = x[:, shift:shift + rout]            # static lane-offset slice, (tc, rout)
        acc = acc + jnp.dot(w_ref[t], slab, preferred_element_type=jnp.float32)
    acc_ref[...] += acc

    @pl.when(c == pl.num_programs(1) - 1)
    def _finalize():
        o_ref[0] = (acc_ref[...] + b_ref[...]).astype(o_ref.dtype)


# ----------------------------------------------------------------------------
# Wrapper: Classifier_Module.forward
# ----------------------------------------------------------------------------
def classifier_module_forward(x, weights, biases, dilations, paddings, *,
                              use_bf16_inputs=False,
                              vmem_budget_bytes=12 * 1024 * 1024):
    """x: (B, Cin, H, W) NCHW.  Returns the summed dilated convs, NCHW f32."""
    B, C, H, W = x.shape
    Cout, Cin, kh, kw = weights[0].shape
    assert Cin == C
    max_pad = max(paddings)
    Ho = H + 2 * paddings[0] - dilations[0] * (kh - 1)      # stride 1
    Wo = W - (kw - 1)
    for d, p in zip(dilations, paddings):                   # all branches share the output shape
        assert H + 2 * p - d * (kh - 1) == Ho

    # Flat-row formulation: output position m = ho*W + wo; tap (i, dh, dw) reads flat row m + shift.
    # Columns wo in [Wo, W) are junk (wrap into the next row) and are sliced off afterwards.
    rout = Ho * W
    shifts = []
    for d, p in zip(dilations, paddings):
        off = max_pad - p
        for dh in range(kh):
            for dw in range(kw):
                shifts.append((off + dh * d) * W + dw)
    T = len(shifts)
    Hp = H + 2 * max_pad
    rflat = _round_up(max(Hp * W, rout + max(shifts)), 128)

    # Host-side prep: a single cheap zero pad + reshape of the raw input (no patch replication).
    in_dtype = jnp.bfloat16 if use_bf16_inputs else jnp.float32
    xpad = jnp.pad(x.astype(in_dtype), ((0, 0), (0, 0), (max_pad, max_pad), (0, 0)))
    xflat = jnp.pad(xpad.reshape(B, C, Hp * W), ((0, 0), (0, 0), (0, rflat - Hp * W)))

    wall = jnp.stack(
        [weights[i][:, :, dh, dw] for i in range(len(weights))
         for dh in range(kh) for dw in range(kw)], axis=0).astype(in_dtype)   # (T, Cout, C)
    bsum = sum(biases).astype(jnp.float32).reshape(Cout, 1)                   # bias folding

    # Choose the contraction (C) tile from an explicit per-step VMEM budget.
    isz = jnp.dtype(in_dtype).itemsize

    def step_bytes(tc):
        xb = tc * rflat * isz
        wb = T * Cout * tc * isz
        ob = Cout * rout * 4
        return 2 * (xb + wb + ob) + Cout * rout * 4 + 2 * Cout * 4   # dbl-buffered in/out + acc + bias

    if step_bytes(C) <= vmem_budget_bytes:
        tc = C
    else:
        tc = 128
        while C % (2 * tc) == 0 and step_bytes(2 * tc) <= vmem_budget_bytes:
            tc *= 2
        if C % tc != 0:
            tc = C  # TODO(synk): pad C to a multiple of the tile instead of falling back
    n_ct = C // tc if C % tc == 0 else 1

    kernel = functools.partial(_fused_dilated_conv_kernel, shifts=tuple(shifts))

    cost = pl.CostEstimate(                                   # real, un-padded work
        flops=2 * B * Ho * Wo * Cout * T * C,
        transcendentals=0,
        bytes_accessed=B * C * H * W * isz + T * Cout * C * isz + Cout * 4
                       + B * Cout * Ho * Wo * 4)

    out_flat = pl.pallas_call(
        kernel,
        out_shape=jax.ShapeDtypeStruct((B, Cout, rout), jnp.float32),
        grid=(B, n_ct),
        in_specs=[
            pl.BlockSpec((1, tc, rflat), lambda b, c: (b, c, 0)),     # raw padded rows, C block
            pl.BlockSpec((T, Cout, tc), lambda b, c: (0, 0, c)),      # per-tap weights, C block
            pl.BlockSpec((Cout, 1), lambda b, c: (0, 0)),             # combined bias
        ],
        out_specs=pl.BlockSpec((1, Cout, rout), lambda b, c: (b, 0, 0)),
        scratch_shapes=[pltpu.VMEM((Cout, rout), jnp.float32)],
        compiler_params=pltpu.CompilerParams(
            dimension_semantics=("parallel", "arbitrary"),
            vmem_limit_bytes=int(min(max(4 * step_bytes(tc), 16 * 1024 * 1024),
                                     64 * 1024 * 1024))),
        cost_estimate=cost,
    )(xflat, wall, bsum)

    # Drop junk columns; result is already NCHW -> no transpose pass over the output.
    return out_flat.reshape(B, Cout, Ho, W)[:, :, :, :Wo]


# ----------------------------------------------------------------------------
# Deterministic parameters mirroring Classifier_Module.__init__
# ----------------------------------------------------------------------------
def make_params(key, rate, kernel_size, icol, ocol):
    kh, kw = kernel_size
    padding_series = [rate * 0, rate * 1, rate * 2]
    dilation_series = [1 + rate * 0,
                       1 + rate * 2 / (kh - 1),
                       1 + rate * 4 / (kh - 1)]
    # Hard precondition: nn.Conv2d needs integer dilations, so rate/kernel_size must make
    # rate*2*i/(kh-1) integral (the reference __init__ would otherwise fail inside PyTorch too).
    if not all(float(d).is_integer() for d in dilation_series):
        raise ValueError("rate/kernel_size produce non-integer dilations; "
                         "the reference nn.Conv2d cannot express this configuration either")
    dilation_series = [int(d) for d in dilation_series]

    keys = jax.random.split(key, 6)
    fan_in = icol * kh * kw
    bound = 1.0 / (fan_in ** 0.5)
    weights, biases = [], []
    for i in range(3):
        w = 0.01 * jax.random.normal(keys[2 * i], (ocol, icol, kh, kw), jnp.float32)  # normal_(0,0.01)
        b = jax.random.uniform(keys[2 * i + 1], (ocol,), jnp.float32, -bound, bound)  # default bias init
        weights.append(w)
        biases.append(b)
    return weights, biases, dilation_series, padding_series


# ----------------------------------------------------------------------------
# Pure-JAX reference (lax dilated conv) for correctness checking
# ----------------------------------------------------------------------------
def reference_forward(x, weights, biases, dilations, paddings):
    out = None
    for w, b, d, p in zip(weights, biases, dilations, paddings):
        y = jax.lax.conv_general_dilated(
            x, w, window_strides=(1, 1), padding=[(p, p), (0, 0)],
            rhs_dilation=(d, 1), dimension_numbers=("NCHW", "OIHW", "NCHW"))
        y = y + b[None, :, None, None]
        out = y if out is None else out + y
    return out


if __name__ == "__main__":
    key = jax.random.PRNGKey(0)
    kx, kp = jax.random.split(key)

    # Small shapes consistent with the module: rate=1, kernel=(3,3), icol=4, ocol=8.
    rate, kernel_size, icol, ocol = 1, (3, 3), 4, 8
    B, H, W = 2, 16, 16

    x = jax.random.normal(kx, (B, icol, H, W), jnp.float32)
    weights, biases, dilations, paddings = make_params(kp, rate, kernel_size, icol, ocol)

    fwd = jax.jit(lambda xx, ws, bs: classifier_module_forward(xx, ws, bs, dilations, paddings))
    out = jax.block_until_ready(fwd(x, weights, biases))

    ref = reference_forward(x, weights, biases, dilations, paddings)
    Ho, Wo = H - (kernel_size[0] - 1), W - (kernel_size[1] - 1)
    assert out.shape == (B, ocol, Ho, Wo), out.shape
    assert ref.shape == out.shape
    assert bool(jnp.all(jnp.isfinite(out)))
    max_err = float(jnp.max(jnp.abs(out - ref)))
    assert max_err < 1e-3, f"max abs error vs reference dilated conv: {max_err}"
    print("KERNEL_OK")
</pallas_src>

<mosaic_0001>
module attributes {stable_mosaic.version = 11 : i64} {
  func.func @_fused_dilated_conv_kernel(%arg0: i32, %arg1: i32, %arg2: memref<1x4x384xf32, #tpu.memory_space<vmem>>, %arg3: memref<27x8x4xf32, #tpu.memory_space<vmem>>, %arg4: memref<8x1xf32, #tpu.memory_space<vmem>>, %arg5: memref<1x8x224xf32, #tpu.memory_space<vmem>>, %arg6: memref<8x224xf32, #tpu.memory_space<vmem>>) attributes {dimension_semantics = [#tpu.dimension_semantics<parallel>, #tpu.dimension_semantics<arbitrary>], iteration_bounds = array<i64: 2, 1>, scalar_prefetch = 0 : i64, scratch_operands = 1 : i64, tpu.core_type = #tpu.core_type<tc>, window_params = [{transform_indices = @transform_0, window_bounds = array<i64: 1, 4, 384>}, {transform_indices = @transform_1, window_bounds = array<i64: 27, 8, 4>}, {pipeline_mode = #tpu.pipeline_mode<synchronous>, transform_indices = @transform_2, window_bounds = array<i64: 8, 1>}, {transform_indices = @transform_3, window_bounds = array<i64: 1, 8, 224>}]} {
    %c0_i32 = arith.constant 0 : i32
    %0 = arith.cmpi eq, %arg1, %c0_i32 : i32
    %1 = arith.extui %0 : i1 to i32
    %c0_i32_0 = arith.constant 0 : i32
    %2 = arith.cmpi ne, %1, %c0_i32_0 : i32
    scf.if %2 {
      %cst_91 = arith.constant 0.000000e+00 : f32
      %147 = vector.broadcast %cst_91 : f32 to vector<8x224xf32>
      %c0_92 = arith.constant 0 : index
      %c0_93 = arith.constant 0 : index
      %148 = vector.load %arg6[%c0_92, %c0_93] : memref<8x224xf32, #tpu.memory_space<vmem>>, vector<8x224xf32>
      tpu.vector_store %arg6[%c0_92, %c0_93], %147 {strides = array<i32>} : memref<8x224xf32, #tpu.memory_space<vmem>>, vector<8x224xf32>,
    } else {
    }
    %c0 = arith.constant 0 : index
    %c0_1 = arith.constant 0 : index
    %c0_2 = arith.constant 0 : index
    %3 = vector.load %arg2[%c0, %c0_1, %c0_2] : memref<1x4x384xf32, #tpu.memory_space<vmem>>, vector<1x4x384xf32>
    %4 = vector.shape_cast %3 : vector<1x4x384xf32> to vector<4x384xf32>
    %cst = arith.constant 0.000000e+00 : f32
    %5 = vector.broadcast %cst : f32 to vector<8x224xf32>
    %6 = vector.extract_strided_slice %4 {offsets = [0, 32], sizes = [4, 224], strides = [1, 1]} : vector<4x384xf32> to vector<4x224xf32>
    %c0_3 = arith.constant 0 : index
    %c0_4 = arith.constant 0 : index
    %c0_5 = arith.constant 0 : index
    %7 = vector.load %arg3[%c0_3, %c0_4, %c0_5] : memref<27x8x4xf32, #tpu.memory_space<vmem>>, vector<1x8x4xf32>
    %8 = vector.shape_cast %7 : vector<1x8x4xf32> to vector<8x4xf32>
    %cst_6 = arith.constant dense<0.000000e+00> : vector<8x224xf32>
    %9 = tpu.matmul %8, %6, %cst_6 {dimension_numbers = #tpu.dot_dimension_numbers<[1], [0], [0], [1], [0, 0, 1, 1], [], []>} : vector<8x4xf32>, vector<4x224xf32>, vector<8x224xf32> -> vector<8x224xf32>
    %10 = arith.addf %5, %9 : vector<8x224xf32>
    %11 = vector.extract_strided_slice %4 {offsets = [0, 33], sizes = [4, 224], strides = [1, 1]} : vector<4x384xf32> to vector<4x224xf32>
    %c1 = arith.constant 1 : index
    %c0_7 = arith.constant 0 : index
    %c0_8 = arith.constant 0 : index
    %12 = vector.load %arg3[%c1, %c0_7, %c0_8] : memref<27x8x4xf32, #tpu.memory_space<vmem>>, vector<1x8x4xf32>
    %13 = vector.shape_cast %12 : vector<1x8x4xf32> to vector<8x4xf32>
    %cst_9 = arith.constant dense<0.000000e+00> : vector<8x224xf32>
    %14 = tpu.matmul %13, %11, %cst_9 {dimension_numbers = #tpu.dot_dimension_numbers<[1], [0], [0], [1], [0, 0, 1, 1], [], []>} : vector<8x4xf32>, vector<4x224xf32>, vector<8x224xf32> -> vector<8x224xf32>
    %15 = arith.addf %10, %14 : vector<8x224xf32>
    %16 = vector.extract_strided_slice %4 {offsets = [0, 34], sizes = [4, 224], strides = [1, 1]} : vector<4x384xf32> to vector<4x224xf32>
    %c2 = arith.constant 2 : index
    %c0_10 = arith.constant 0 : index
    %c0_11 = arith.constant 0 : index
    %17 = vector.load %arg3[%c2, %c0_10, %c0_11] : memref<27x8x4xf32, #tpu.memory_space<vmem>>, vector<1x8x4xf32>
    %18 = vector.shape_cast %17 : vector<1x8x4xf32> to vector<8x4xf32>
    %cst_12 = arith.constant dense<0.000000e+00> : vector<8x224xf32>
    %19 = tpu.matmul %18, %16, %cst_12 {dimension_numbers = #tpu.dot_dimension_numbers<[1], [0], [0], [1], [0, 0, 1, 1], [], []>} : vector<8x4xf32>, vector<4x224xf32>, vector<8x224xf32> -> vector<8x224xf32>
    %20 = arith.addf %15, %19 : vector<8x224xf32>
    %21 = vector.extract_strided_slice %4 {offsets = [0, 48], sizes = [4, 224], strides = [1, 1]} : vector<4x384xf32> to vector<4x224xf32>
    %c3 = arith.constant 3 : index
    %c0_13 = arith.constant 0 : index
    %c0_14 = arith.constant 0 : index
    %22 = vector.load %arg3[%c3, %c0_13, %c0_14] : memref<27x8x4xf32, #tpu.memory_space<vmem>>, vector<1x8x4xf32>
    %23 = vector.shape_cast %22 : vector<1x8x4xf32> to vector<8x4xf32>
    %cst_15 = arith.constant dense<0.000000e+00> : vector<8x224xf32>
    %24 = tpu.matmul %23, %21, %cst_15 {dimension_numbers = #tpu.dot_dimension_numbers<[1], [0], [0], [1], [0, 0, 1, 1], [], []>} : vector<8x4xf32>, vector<4x224xf32>, vector<8x224xf32> -> vector<8x224xf32>
    %25 = arith.addf %20, %24 : vector<8x224xf32>
    %26 = vector.extract_strided_slice %4 {offsets = [0, 49], sizes = [4, 224], strides = [1, 1]} : vector<4x384xf32> to vector<4x224xf32>
    %c4 = arith.constant 4 : index
    %c0_16 = arith.constant 0 : index
    %c0_17 = arith.constant 0 : index
    %27 = vector.load %arg3[%c4, %c0_16, %c0_17] : memref<27x8x4xf32, #tpu.memory_space<vmem>>, vector<1x8x4xf32>
    %28 = vector.shape_cast %27 : vector<1x8x4xf32> to vector<8x4xf32>
    %cst_18 = arith.constant dense<0.000000e+00> : vector<8x224xf32>
    %29 = tpu.matmul %28, %26, %cst_18 {dimension_numbers = #tpu.dot_dimension_numbers<[1], [0], [0], [1], [0, 0, 1, 1], [], []>} : vector<8x4xf32>, vector<4x224xf32>, vector<8x224xf32> -> vector<8x224xf32>
    %30 = arith.addf %25, %29 : vector<8x224xf32>
    %31 = vector.extract_strided_slice %4 {offsets = [0, 50], sizes = [4, 224], strides = [1, 1]} : vector<4x384xf32> to vector<4x224xf32>
    %c5 = arith.constant 5 : index
    %c0_19 = arith.constant 0 : index
    %c0_20 = arith.constant 0 : index
    %32 = vector.load %arg3[%c5, %c0_19, %c0_20] : memref<27x8x4xf32, #tpu.memory_space<vmem>>, vector<1x8x4xf32>
    %33 = vector.shape_cast %32 : vector<1x8x4xf32> to vector<8x4xf32>
    %cst_21 = arith.constant dense<0.000000e+00> : vector<8x224xf32>
    %34 = tpu.matmul %33, %31, %cst_21 {dimension_numbers = #tpu.dot_dimension_numbers<[1], [0], [0], [1], [0, 0, 1, 1], [], []>} : vector<8x4xf32>, vector<4x224xf32>, vector<8x224xf32> -> vector<8x224xf32>
    %35 = arith.addf %30, %34 : vector<8x224xf32>
    %36 = vector.extract_strided_slice %4 {offsets = [0, 64], sizes = [4, 224], strides = [1, 1]} : vector<4x384xf32> to vector<4x224xf32>
    %c6 = arith.constant 6 : index
    %c0_22 = arith.constant 0 : index
    %c0_23 = arith.constant 0 : index
    %37 = vector.load %arg3[%c6, %c0_22, %c0_23] : memref<27x8x4xf32, #tpu.memory_space<vmem>>, vector<1x8x4xf32>
    %38 = vector.shape_cast %37 : vector<1x8x4xf32> to vector<8x4xf32>
    %cst_24 = arith.constant dense<0.000000e+00> : vector<8x224xf32>
    %39 = tpu.matmul %38, %36, %cst_24 {dimension_numbers = #tpu.dot_dimension_numbers<[1], [0], [0], [1], [0, 0, 1, 1], [], []>} : vector<8x4xf32>, vector<4x224xf32>, vector<8x224xf32> -> vector<8x224xf32>
    %40 = arith.addf %35, %39 : vector<8x224xf32>
    %41 = vector.extract_strided_slice %4 {offsets = [0, 65], sizes = [4, 224], strides = [1, 1]} : vector<4x384xf32> to vector<4x224xf32>
    %c7 = arith.constant 7 : index
    %c0_25 = arith.constant 0 : index
    %c0_26 = arith.constant 0 : index
    %42 = vector.load %arg3[%c7, %c0_25, %c0_26] : memref<27x8x4xf32, #tpu.memory_space<vmem>>, vector<1x8x4xf32>
    %43 = vector.shape_cast %42 : vector<1x8x4xf32> to vector<8x4xf32>
    %cst_27 = arith.constant dense<0.000000e+00> : vector<8x224xf32>
    %44 = tpu.matmul %43, %41, %cst_27 {dimension_numbers = #tpu.dot_dimension_numbers<[1], [0], [0], [1], [0, 0, 1, 1], [], []>} : vector<8x4xf32>, vector<4x224xf32>, vector<8x224xf32> -> vector<8x224xf32>
    %45 = arith.addf %40, %44 : vector<8x224xf32>
    %46 = vector.extract_strided_slice %4 {offsets = [0, 66], sizes = [4, 224], strides = [1, 1]} : vector<4x384xf32> to vector<4x224xf32>
    %c8 = arith.constant 8 : index
    %c0_28 = arith.constant 0 : index
    %c0_29 = arith.constant 0 : index
    %47 = vector.load %arg3[%c8, %c0_28, %c0_29] : memref<27x8x4xf32, #tpu.memory_space<vmem>>, vector<1x8x4xf32>
    %48 = vector.shape_cast %47 : vector<1x8x4xf32> to vector<8x4xf32>
    %cst_30 = arith.constant dense<0.000000e+00> : vector<8x224xf32>
    %49 = tpu.matmul %48, %46, %cst_30 {dimension_numbers = #tpu.dot_dimension_numbers<[1], [0], [0], [1], [0, 0, 1, 1], [], []>} : vector<8x4xf32>, vector<4x224xf32>, vector<8x224xf32> -> vector<8x224xf32>
    %50 = arith.addf %45, %49 : vector<8x224xf32>
    %51 = vector.extract_strided_slice %4 {offsets = [0, 16], sizes = [4, 224], strides = [1, 1]} : vector<4x384xf32> to vector<4x224xf32>
    %c9 = arith.constant 9 : index
    %c0_31 = arith.constant 0 : index
    %c0_32 = arith.constant 0 : index
    %52 = vector.load %arg3[%c9, %c0_31, %c0_32] : memref<27x8x4xf32, #tpu.memory_space<vmem>>, vector<1x8x4xf32>
    %53 = vector.shape_cast %52 : vector<1x8x4xf32> to vector<8x4xf32>
    %cst_33 = arith.constant dense<0.000000e+00> : vector<8x224xf32>
    %54 = tpu.matmul %53, %51, %cst_33 {dimension_numbers = #tpu.dot_dimension_numbers<[1], [0], [0], [1], [0, 0, 1, 1], [], []>} : vector<8x4xf32>, vector<4x224xf32>, vector<8x224xf32> -> vector<8x224xf32>
    %55 = arith.addf %50, %54 : vector<8x224xf32>
    %56 = vector.extract_strided_slice %4 {offsets = [0, 17], sizes = [4, 224], strides = [1, 1]} : vector<4x384xf32> to vector<4x224xf32>
    %c10 = arith.constant 10 : index
    %c0_34 = arith.constant 0 : index
    %c0_35 = arith.constant 0 : index
    %57 = vector.load %arg3[%c10, %c0_34, %c0_35] : memref<27x8x4xf32, #tpu.memory_space<vmem>>, vector<1x8x4xf32>
    %58 = vector.shape_cast %57 : vector<1x8x4xf32> to vector<8x4xf32>
    %cst_36 = arith.constant dense<0.000000e+00> : vector<8x224xf32>
    %59 = tpu.matmul %58, %56, %cst_36 {dimension_numbers = #tpu.dot_dimension_numbers<[1], [0], [0], [1], [0, 0, 1, 1], [], []>} : vector<8x4xf32>, vector<4x224xf32>, vector<8x224xf32> -> vector<8x224xf32>
    %60 = arith.addf %55, %59 : vector<8x224xf32>
    %61 = vector.extract_strided_slice %4 {offsets = [0, 18], sizes = [4, 224], strides = [1, 1]} : vector<4x384xf32> to vector<4x224xf32>
    %c11 = arith.constant 11 : index
    %c0_37 = arith.constant 0 : index
    %c0_38 = arith.constant 0 : index
    %62 = vector.load %arg3[%c11, %c0_37, %c0_38] : memref<27x8x4xf32, #tpu.memory_space<vmem>>, vector<1x8x4xf32>
    %63 = vector.shape_cast %62 : vector<1x8x4xf32> to vector<8x4xf32>
    %cst_39 = arith.constant dense<0.000000e+00> : vector<8x224xf32>
    %64 = tpu.matmul %63, %61, %cst_39 {dimension_numbers = #tpu.dot_dimension_numbers<[1], [0], [0], [1], [0, 0, 1, 1], [], []>} : vector<8x4xf32>, vector<4x224xf32>, vector<8x224xf32> -> vector<8x224xf32>
    %65 = arith.addf %60, %64 : vector<8x224xf32>
    %66 = vector.extract_strided_slice %4 {offsets = [0, 48], sizes = [4, 224], strides = [1, 1]} : vector<4x384xf32> to vector<4x224xf32>
    %c12 = arith.constant 12 : index
    %c0_40 = arith.constant 0 : index
    %c0_41 = arith.constant 0 : index
    %67 = vector.load %arg3[%c12, %c0_40, %c0_41] : memref<27x8x4xf32, #tpu.memory_space<vmem>>, vector<1x8x4xf32>
    %68 = vector.shape_cast %67 : vector<1x8x4xf32> to vector<8x4xf32>
    %cst_42 = arith.constant dense<0.000000e+00> : vector<8x224xf32>
    %69 = tpu.matmul %68, %66, %cst_42 {dimension_numbers = #tpu.dot_dimension_numbers<[1], [0], [0], [1], [0, 0, 1, 1], [], []>} : vector<8x4xf32>, vector<4x224xf32>, vector<8x224xf32> -> vector<8x224xf32>
    %70 = arith.addf %65, %69 : vector<8x224xf32>
    %71 = vector.extract_strided_slice %4 {offsets = [0, 49], sizes = [4, 224], strides = [1, 1]} : vector<4x384xf32> to vector<4x224xf32>
    %c13 = arith.constant 13 : index
    %c0_43 = arith.constant 0 : index
    %c0_44 = arith.constant 0 : index
    %72 = vector.load %arg3[%c13, %c0_43, %c0_44] : memref<27x8x4xf32, #tpu.memory_space<vmem>>, vector<1x8x4xf32>
    %73 = vector.shape_cast %72 : vector<1x8x4xf32> to vector<8x4xf32>
    %cst_45 = arith.constant dense<0.000000e+00> : vector<8x224xf32>
    %74 = tpu.matmul %73, %71, %cst_45 {dimension_numbers = #tpu.dot_dimension_numbers<[1], [0], [0], [1], [0, 0, 1, 1], [], []>} : vector<8x4xf32>, vector<4x224xf32>, vector<8x224xf32> -> vector<8x224xf32>
    %75 = arith.addf %70, %74 : vector<8x224xf32>
    %76 = vector.extract_strided_slice %4 {offsets = [0, 50], sizes = [4, 224], strides = [1, 1]} : vector<4x384xf32> to vector<4x224xf32>
    %c14 = arith.constant 14 : index
    %c0_46 = arith.constant 0 : index
    %c0_47 = arith.constant 0 : index
    %77 = vector.load %arg3[%c14, %c0_46, %c0_47] : memref<27x8x4xf32, #tpu.memory_space<vmem>>, vector<1x8x4xf32>
    %78 = vector.shape_cast %77 : vector<1x8x4xf32> to vector<8x4xf32>
    %cst_48 = arith.constant dense<0.000000e+00> : vector<8x224xf32>
    %79 = tpu.matmul %78, %76, %cst_48 {dimension_numbers = #tpu.dot_dimension_numbers<[1], [0], [0], [1], [0, 0, 1, 1], [], []>} : vector<8x4xf32>, vector<4x224xf32>, vector<8x224xf32> -> vector<8x224xf32>
    %80 = arith.addf %75, %79 : vector<8x224xf32>
    %81 = vector.extract_strided_slice %4 {offsets = [0, 80], sizes = [4, 224], strides = [1, 1]} : vector<4x384xf32> to vector<4x224xf32>
    %c15 = arith.constant 15 : index
    %c0_49 = arith.constant 0 : index
    %c0_50 = arith.constant 0 : index
    %82 = vector.load %arg3[%c15, %c0_49, %c0_50] : memref<27x8x4xf32, #tpu.memory_space<vmem>>, vector<1x8x4xf32>
    %83 = vector.shape_cast %82 : vector<1x8x4xf32> to vector<8x4xf32>
    %cst_51 = arith.constant dense<0.000000e+00> : vector<8x224xf32>
    %84 = tpu.matmul %83, %81, %cst_51 {dimension_numbers = #tpu.dot_dimension_numbers<[1], [0], [0], [1], [0, 0, 1, 1], [], []>} : vector<8x4xf32>, vector<4x224xf32>, vector<8x224xf32> -> vector<8x224xf32>
    %85 = arith.addf %80, %84 : vector<8x224xf32>
    %86 = vector.extract_strided_slice %4 {offsets = [0, 81], sizes = [4, 224], strides = [1, 1]} : vector<4x384xf32> to vector<4x224xf32>
    %c16 = arith.constant 16 : index
    %c0_52 = arith.constant 0 : index
    %c0_53 = arith.constant 0 : index
    %87 = vector.load %arg3[%c16, %c0_52, %c0_53] : memref<27x8x4xf32, #tpu.memory_space<vmem>>, vector<1x8x4xf32>
    %88 = vector.shape_cast %87 : vector<1x8x4xf32> to vector<8x4xf32>
    %cst_54 = arith.constant dense<0.000000e+00> : vector<8x224xf32>
    %89 = tpu.matmul %88, %86, %cst_54 {dimension_numbers = #tpu.dot_dimension_numbers<[1], [0], [0], [1], [0, 0, 1, 1], [], []>} : vector<8x4xf32>, vector<4x224xf32>, vector<8x224xf32> -> vector<8x224xf32>
    %90 = arith.addf %85, %89 : vector<8x224xf32>
    %91 = vector.extract_strided_slice %4 {offsets = [0, 82], sizes = [4, 224], strides = [1, 1]} : vector<4x384xf32> to vector<4x224xf32>
    %c17 = arith.constant 17 : index
    %c0_55 = arith.constant 0 : index
    %c0_56 = arith.constant 0 : index
    %92 = vector.load %arg3[%c17, %c0_55, %c0_56] : memref<27x8x4xf32, #tpu.memory_space<vmem>>, vector<1x8x4xf32>
    %93 = vector.shape_cast %92 : vector<1x8x4xf32> to vector<8x4xf32>
    %cst_57 = arith.constant dense<0.000000e+00> : vector<8x224xf32>
    %94 = tpu.matmul %93, %91, %cst_57 {dimension_numbers = #tpu.dot_dimension_numbers<[1], [0], [0], [1], [0, 0, 1, 1], [], []>} : vector<8x4xf32>, vector<4x224xf32>, vector<8x224xf32> -> vector<8x224xf32>
    %95 = arith.addf %90, %94 : vector<8x224xf32>
    %96 = vector.extract_strided_slice %4 {offsets = [0, 0], sizes = [4, 224], strides = [1, 1]} : vector<4x384xf32> to vector<4x224xf32>
    %c18 = arith.constant 18 : index
    %c0_58 = arith.constant 0 : index
    %c0_59 = arith.constant 0 : index
    %97 = vector.load %arg3[%c18, %c0_58, %c0_59] : memref<27x8x4xf32, #tpu.memory_space<vmem>>, vector<1x8x4xf32>
    %98 = vector.shape_cast %97 : vector<1x8x4xf32> to vector<8x4xf32>
    %cst_60 = arith.constant dense<0.000000e+00> : vector<8x224xf32>
    %99 = tpu.matmul %98, %96, %cst_60 {dimension_numbers = #tpu.dot_dimension_numbers<[1], [0], [0], [1], [0, 0, 1, 1], [], []>} : vector<8x4xf32>, vector<4x224xf32>, vector<8x224xf32> -> vector<8x224xf32>
    %100 = arith.addf %95, %99 : vector<8x224xf32>
    %101 = vector.extract_strided_slice %4 {offsets = [0, 1], sizes = [4, 224], strides = [1, 1]} : vector<4x384xf32> to vector<4x224xf32>
    %c19 = arith.constant 19 : index
    %c0_61 = arith.constant 0 : index
    %c0_62 = arith.constant 0 : index
    %102 = vector.load %arg3[%c19, %c0_61, %c0_62] : memref<27x8x4xf32, #tpu.memory_space<vmem>>, vector<1x8x4xf32>
    %103 = vector.shape_cast %102 : vector<1x8x4xf32> to vector<8x4xf32>
    %cst_63 = arith.constant dense<0.000000e+00> : vector<8x224xf32>
    %104 = tpu.matmul %103, %101, %cst_63 {dimension_numbers = #tpu.dot_dimension_numbers<[1], [0], [0], [1], [0, 0, 1, 1], [], []>} : vector<8x4xf32>, vector<4x224xf32>, vector<8x224xf32> -> vector<8x224xf32>
    %105 = arith.addf %100, %104 : vector<8x224xf32>
    %106 = vector.extract_strided_slice %4 {offsets = [0, 2], sizes = [4, 224], strides = [1, 1]} : vector<4x384xf32> to vector<4x224xf32>
    %c20 = arith.constant 20 : index
    %c0_64 = arith.constant 0 : index
    %c0_65 = arith.constant 0 : index
    %107 = vector.load %arg3[%c20, %c0_64, %c0_65] : memref<27x8x4xf32, #tpu.memory_space<vmem>>, vector<1x8x4xf32>
    %108 = vector.shape_cast %107 : vector<1x8x4xf32> to vector<8x4xf32>
    %cst_66 = arith.constant dense<0.000000e+00> : vector<8x224xf32>
    %109 = tpu.matmul %108, %106, %cst_66 {dimension_numbers = #tpu.dot_dimension_numbers<[1], [0], [0], [1], [0, 0, 1, 1], [], []>} : vector<8x4xf32>, vector<4x224xf32>, vector<8x224xf32> -> vector<8x224xf32>
    %110 = arith.addf %105, %109 : vector<8x224xf32>
    %111 = vector.extract_strided_slice %4 {offsets = [0, 48], sizes = [4, 224], strides = [1, 1]} : vector<4x384xf32> to vector<4x224xf32>
    %c21 = arith.constant 21 : index
    %c0_67 = arith.constant 0 : index
    %c0_68 = arith.constant 0 : index
    %112 = vector.load %arg3[%c21, %c0_67, %c0_68] : memref<27x8x4xf32, #tpu.memory_space<vmem>>, vector<1x8x4xf32>
    %113 = vector.shape_cast %112 : vector<1x8x4xf32> to vector<8x4xf32>
    %cst_69 = arith.constant dense<0.000000e+00> : vector<8x224xf32>
    %114 = tpu.matmul %113, %111, %cst_69 {dimension_numbers = #tpu.dot_dimension_numbers<[1], [0], [0], [1], [0, 0, 1, 1], [], []>} : vector<8x4xf32>, vector<4x224xf32>, vector<8x224xf32> -> vector<8x224xf32>
    %115 = arith.addf %110, %114 : vector<8x224xf32>
    %116 = vector.extract_strided_slice %4 {offsets = [0, 49], sizes = [4, 224], strides = [1, 1]} : vector<4x384xf32> to vector<4x224xf32>
    %c22 = arith.constant 22 : index
    %c0_70 = arith.constant 0 : index
    %c0_71 = arith.constant 0 : index
    %117 = vector.load %arg3[%c22, %c0_70, %c0_71] : memref<27x8x4xf32, #tpu.memory_space<vmem>>, vector<1x8x4xf32>
    %118 = vector.shape_cast %117 : vector<1x8x4xf32> to vector<8x4xf32>
    %cst_72 = arith.constant dense<0.000000e+00> : vector<8x224xf32>
    %119 = tpu.matmul %118, %116, %cst_72 {dimension_numbers = #tpu.dot_dimension_numbers<[1], [0], [0], [1], [0, 0, 1, 1], [], []>} : vector<8x4xf32>, vector<4x224xf32>, vector<8x224xf32> -> vector<8x224xf32>
    %120 = arith.addf %115, %119 : vector<8x224xf32>
    %121 = vector.extract_strided_slice %4 {offsets = [0, 50], sizes = [4, 224], strides = [1, 1]} : vector<4x384xf32> to vector<4x224xf32>
    %c23 = arith.constant 23 : index
    %c0_73 = arith.constant 0 : index
    %c0_74 = arith.constant 0 : index
    %122 = vector.load %arg3[%c23, %c0_73, %c0_74] : memref<27x8x4xf32, #tpu.memory_space<vmem>>, vector<1x8x4xf32>
    %123 = vector.shape_cast %122 : vector<1x8x4xf32> to vector<8x4xf32>
    %cst_75 = arith.constant dense<0.000000e+00> : vector<8x224xf32>
    %124 = tpu.matmul %123, %121, %cst_75 {dimension_numbers = #tpu.dot_dimension_numbers<[1], [0], [0], [1], [0, 0, 1, 1], [], []>} : vector<8x4xf32>, vector<4x224xf32>, vector<8x224xf32> -> vector<8x224xf32>
    %125 = arith.addf %120, %124 : vector<8x224xf32>
    %126 = vector.extract_strided_slice %4 {offsets = [0, 96], sizes = [4, 224], strides = [1, 1]} : vector<4x384xf32> to vector<4x224xf32>
    %c24 = arith.constant 24 : index
    %c0_76 = arith.constant 0 : index
    %c0_77 = arith.constant 0 : index
    %127 = vector.load %arg3[%c24, %c0_76, %c0_77] : memref<27x8x4xf32, #tpu.memory_space<vmem>>, vector<1x8x4xf32>
    %128 = vector.shape_cast %127 : vector<1x8x4xf32> to vector<8x4xf32>
    %cst_78 = arith.constant dense<0.000000e+00> : vector<8x224xf32>
    %129 = tpu.matmul %128, %126, %cst_78 {dimension_numbers = #tpu.dot_dimension_numbers<[1], [0], [0], [1], [0, 0, 1, 1], [], []>} : vector<8x4xf32>, vector<4x224xf32>, vector<8x224xf32> -> vector<8x224xf32>
    %130 = arith.addf %125, %129 : vector<8x224xf32>
    %131 = vector.extract_strided_slice %4 {offsets = [0, 97], sizes = [4, 224], strides = [1, 1]} : vector<4x384xf32> to vector<4x224xf32>
    %c25 = arith.constant 25 : index
    %c0_79 = arith.constant 0 : index
    %c0_80 = arith.constant 0 : index
    %132 = vector.load %arg3[%c25, %c0_79, %c0_80] : memref<27x8x4xf32, #tpu.memory_space<vmem>>, vector<1x8x4xf32>
    %133 = vector.shape_cast %132 : vector<1x8x4xf32> to vector<8x4xf32>
    %cst_81 = arith.constant dense<0.000000e+00> : vector<8x224xf32>
    %134 = tpu.matmul %133, %131, %cst_81 {dimension_numbers = #tpu.dot_dimension_numbers<[1], [0], [0], [1], [0, 0, 1, 1], [], []>} : vector<8x4xf32>, vector<4x224xf32>, vector<8x224xf32> -> vector<8x224xf32>
    %135 = arith.addf %130, %134 : vector<8x224xf32>
    %136 = vector.extract_strided_slice %4 {offsets = [0, 98], sizes = [4, 224], strides = [1, 1]} : vector<4x384xf32> to vector<4x224xf32>
    %c26 = arith.constant 26 : index
    %c0_82 = arith.constant 0 : index
    %c0_83 = arith.constant 0 : index
    %137 = vector.load %arg3[%c26, %c0_82, %c0_83] : memref<27x8x4xf32, #tpu.memory_space<vmem>>, vector<1x8x4xf32>
    %138 = vector.shape_cast %137 : vector<1x8x4xf32> to vector<8x4xf32>
    %cst_84 = arith.constant dense<0.000000e+00> : vector<8x224xf32>
    %139 = tpu.matmul %138, %136, %cst_84 {dimension_numbers = #tpu.dot_dimension_numbers<[1], [0], [0], [1], [0, 0, 1, 1], [], []>} : vector<8x4xf32>, vector<4x224xf32>, vector<8x224xf32> -> vector<8x224xf32>
    %140 = arith.addf %135, %139 : vector<8x224xf32>
    %c0_85 = arith.constant 0 : index
    %c0_86 = arith.constant 0 : index
    %141 = vector.load %arg6[%c0_85, %c0_86] : memref<8x224xf32, #tpu.memory_space<vmem>>, vector<8x224xf32>
    %142 = arith.addf %141, %140 : vector<8x224xf32>
    %c0_87 = arith.constant 0 : index
    %c0_88 = arith.constant 0 : index
    %143 = vector.load %arg6[%c0_87, %c0_88] : memref<8x224xf32, #tpu.memory_space<vmem>>, vector<8x224xf32>
    tpu.vector_store %arg6[%c0_87, %c0_88], %142 {strides = array<i32>} : memref<8x224xf32, #tpu.memory_space<vmem>>, vector<8x224xf32>,
    %c0_i32_89 = arith.constant 0 : i32
    %144 = arith.cmpi eq, %arg1, %c0_i32_89 : i32
    %145 = arith.extui %144 : i1 to i32
    %c0_i32_90 = arith.constant 0 : i32
    %146 = arith.cmpi ne, %145, %c0_i32_90 : i32
    scf.if %146 {
      %c0_91 = arith.constant 0 : index
      %c0_92 = arith.constant 0 : index
      %147 = vector.load %arg6[%c0_91, %c0_92] : memref<8x224xf32, #tpu.memory_space<vmem>>, vector<8x224xf32>
      %c0_93 = arith.constant 0 : index
      %c0_94 = arith.constant 0 : index
      %148 = vector.load %arg4[%c0_93, %c0_94] : memref<8x1xf32, #tpu.memory_space<vmem>>, vector<8x1xf32>
      %149 = vector.broadcast %148 : vector<8x1xf32> to vector<8x224xf32>
      %150 = arith.addf %147, %149 : vector<8x224xf32>
      %c0_95 = arith.constant 0 : index
      %c0_96 = arith.constant 0 : index
      %c0_97 = arith.constant 0 : index
      %151 = vector.load %arg5[%c0_95, %c0_96, %c0_97] : memref<1x8x224xf32, #tpu.memory_space<vmem>>, vector<1x8x224xf32>
      %152 = vector.shape_cast %151 : vector<1x8x224xf32> to vector<8x224xf32>
      %153 = vector.shape_cast %150 : vector<8x224xf32> to vector<1x8x224xf32>
      tpu.vector_store %arg5[%c0_95, %c0_96, %c0_97], %153 {strides = array<i32>} : memref<1x8x224xf32, #tpu.memory_space<vmem>>, vector<1x8x224xf32>,
    } else {
    }
    return
  }
  func.func @transform_0(%arg0: i32, %arg1: i32) -> (i32, i32, i32) {
    %c0_i32 = arith.constant 0 : i32
    %c0_i32_0 = arith.constant 0 : i32
    return %arg0, %arg1, %c0_i32 : i32, i32, i32
  }
  func.func @transform_1(%arg0: i32, %arg1: i32) -> (i32, i32, i32) {
    %c0_i32 = arith.constant 0 : i32
    %c0_i32_0 = arith.constant 0 : i32
    %c0_i32_1 = arith.constant 0 : i32
    return %c0_i32, %c0_i32_0, %arg1 : i32, i32, i32
  }
  func.func @transform_2(%arg0: i32, %arg1: i32) -> (i32, i32) {
    %c0_i32 = arith.constant 0 : i32
    %c0_i32_0 = arith.constant 0 : i32
    %c0_i32_1 = arith.constant 0 : i32
    return %c0_i32, %c0_i32_0 : i32, i32
  }
  func.func @transform_3(%arg0: i32, %arg1: i32) -> (i32, i32, i32) {
    %c0_i32 = arith.constant 0 : i32
    %c0_i32_0 = arith.constant 0 : i32
    %c0_i32_1 = arith.constant 0 : i32
    return %arg0, %c0_i32, %c0_i32_0 : i32, i32, i32
  }
}

</mosaic_0001>

<bundles_post_ra>
// kernel: _lambda_.1
= control target key start
LH: loop header
LB: loop body
LE: loop exit
PB: predicated region body
PF: predicated region fallthrough
CT: control target
= control target key end

     0   :  { %s2918_s12 = smov 0   ;;  %s2920_s13 = smov 0   ;;  %s3250_s0 = inlined_call_operand.vmem [shape: f32[2,4,384], index: 0, kind: input, shape index: {}]   ;;  %s3251_s1 = inlined_call_operand.vmem [shape: f32[27,8,4], index: 1, kind: input, shape index: {}]   ;;  %s3252_s2 = inlined_call_operand.vmem [shape: f32[8,1], index: 2, kind: input, shape index: {}]   ;;  %s3253_s3 = inlined_call_operand.vmem [shape: f32[2,8,224], index: 3, kind: output, shape index: {}]  }
   0x1   :  { %s2922_s14 = smov 0  }
   0x2 LB: > { %s25_s15 = sadd.s32 1, %s2870_s13  ;;  %p2689_p0 = scmp.ge.s32.totalorder %s2874_s14, 1  ;;  %s2874_s14 = sphi %s2922_s14, %s13_s14   ;;  %s2870_s13 = sphi %s2920_s13, %s3255_s13   ;;  %s2866_s12 = sphi %s2918_s12, %s3254_s12  }
   0x3   : > { %p27_p1 = scmp.ge.s32.totalorder %s25_s15, 2  ;;  %p164_p2 = scmp.lt.s32.totalorder %s2874_s14, 3 }
   0x5   : > { %s3257_s15 = smov (%p27_p1, %s25_s15), 0  ;;  %p165_p3 = pnand %p2689_p0, %p164_p2 }
   0x6   : > { %p196_p4 = scmp.lt.s32.totalorder (!%p165_p3), %s2866_s12, 1  ;;  %s2877_s20 = smov (!%p165_p3), 95  }
   0x7   : > { %168 = sbr.rel (%p165_p3) target bundleno = 449 (0x1c1), region = 32  ;;  %s2878_s21 = smov (!%p165_p3), 96  }
   0x8   : > { %s2879_s22 = smov (!%p165_p3), 94   ;;  %s2880_s23 = smov (!%p165_p3), 80  }
   0x9   : > { %s2881_s24 = smov (!%p165_p3), 79   ;;  %s2882_s25 = smov (!%p165_p3), 78  }
   0xa   : > { %s2883_s26 = smov (!%p165_p3), 64   ;;  %s2884_s27 = smov (!%p165_p3), 63  }
   0xb   : > { %s2885_s28 = smov (!%p165_p3), 62   ;;  %s2886_s29 = smov (!%p165_p3), 112  }
   0xc   : > { %s3259_s12 = smov (!%p196_p4, %s2866_s12), 1  ;;  %vm219_vm0 = vcmask 785408   ;;  %v2876_v0 = vmov 0.0   ;;  %s2887_s30 = smov 111   ;;  %v2895_v4 = vmov 0   ;;  %v2586_v5 = vld [vmem:[%s3252_s2] sm:$0xff] }
   0xd   : > { %s2803_s16 = smul.u32 12, %s3259_s12  ;;  %220 = vst.msk [vmem:[#allocation2 + $0x8] sm:$0xff] %vm219_vm0, %v2876_v0  ;;  %311 = vmatprep.mubr.f32.mxu0 %v2876_v0  ;;  %395 = vmatprep.mubr.f32.mxu1 %v2876_v0  ;;  %s2888_s4 = smov 110   ;;  %vm235_vm1 = vcmask 777216   ;;  %vm242_vm2 = vcmask 1043456   ;;  %v2693_v12 = vld [vmem:[%s3251_s1 + $0x8] sm:$0xff] }
   0xe   : > { %s2889_s5 = smov 48   ;;  %s2890_s6 = smov 47   ;;  %2850 = vset.pattern.permute.xlu0 %v2895_v4  ;;  %vm238_vm3 = vcmask 31744   ;;  %v223_v15 = vld [vmem:[%s3251_s1] sm:$0xff]  ;;  %vm410_vm4 = vcmask 769024   ;;  %v2700_v21 = vld [vmem:[%s3251_s1 + $0x10] sm:$0xff] }
   0xf   : > { %s204_s19 = scalar_lea.vmem %s3250_s0, %s2803_s16  ;;  %s2891_s7 = smov 46   ;;  %vm501_vm5 = vcmask 654336   ;;  %v2704_v27 = vld [vmem:[%s3251_s1 + $0x18] sm:$0xff]  ;;  %vm592_vm6 = vcmask 646144   ;;  %v2708_v33 = vld [vmem:[%s3251_s1 + $0x20] sm:$0xff]  ;;  %vm683_vm7 = vcmask 637952  }
  0x10   : > { %v2946_v1 = vld [vmem:[%s204_s19 + $0x8] sm:$0xf]  ;;  %v2948_v2 = vld [vmem:[%s204_s19] sm:$0xff]  ;;  %s2892_s8 = smov 127   ;;  %s2893_s9 = smov 126   ;;  %vm774_vm8 = vcmask 523264  }
  0x11   : > { %233 = vrot.lane.b32.xlu0 %v2946_v1, %s2877_s20  ;;  %v2953_v3 = vcombine.high %v2948_v2, %v2948_v2  ;;  %229 = vrot.lane.b32.xlu1 %v2948_v2, %s2877_s20  ;;  %s2894_s10 = smov 32   ;;  %s2896_s11 = smov 31   ;;  %v2712_v39 = vld [vmem:[%s3251_s1 + $0x28] sm:$0xff]  ;;  %v2716_v45 = vld [vmem:[%s3251_s1 + $0x30] sm:$0xff]  ;;  %vm865_vm9 = vcmask 515072   ;;  %vm956_vm10 = vcmask 506880  }
  0x12   : > { %s2897_s16 = smov 30   ;;  %v2720_v51 = vld [vmem:[%s3251_s1 + $0x38] sm:$0xff]  ;;  %v2724_v57 = vld [vmem:[%s3251_s1 + $0x40] sm:$0xff]  ;;  %vm1045_vm11 = vcmask 916480   ;;  %v2728_v60 = vld [vmem:[%s3251_s1 + $0x48] sm:$0xff]  ;;  %vm1133_vm12 = vcmask 908288  }
  0x13   : > { %vm1221_vm13 = vcmask 900096   ;;  %vm1545_vm14 = vcmask 392192   ;;  %vm1636_vm15 = vcmask 384000  }
  0x15   : > { %318 = vrot.lane.b32.xlu1 %v2948_v2, %s2878_s21  ;;  %231 = vrot.lane.b32.xlu0 %v2953_v3, %s2877_s20 }
  0x19   : > { %406 = vrot.lane.b32.xlu1 %v2953_v3, %s2879_s22  ;;  %320 = vrot.lane.b32.xlu0 %v2953_v3, %s2878_s21 }
  0x1d   : > { %404 = vrot.lane.b32.xlu1 %v2948_v2, %s2879_s22  ;;  %408 = vrot.lane.b32.xlu0 %v2946_v1, %s2879_s22 }
  0x21   : > { %499 = vrot.lane.b32.xlu1 %v2946_v1, %s2880_s23  ;;  %497 = vrot.lane.b32.xlu0 %v2953_v3, %s2880_s23 }
  0x25   : > { %588 = vrot.lane.b32.xlu1 %v2953_v3, %s2881_s24  ;;  %495 = vrot.lane.b32.xlu0 %v2948_v2, %s2880_s23 }
  0x29   : > { %586 = vrot.lane.b32.xlu1 %v2948_v2, %s2881_s24  ;;  %590 = vrot.lane.b32.xlu0 %v2946_v1, %s2881_s24 }
  0x2d   : > { %681 = vrot.lane.b32.xlu1 %v2946_v1, %s2882_s25  ;;  %679 = vrot.lane.b32.xlu0 %v2953_v3, %s2882_s25 }
  0x31   : > { %770 = vrot.lane.b32.xlu1 %v2953_v3, %s2883_s26  ;;  %677 = vrot.lane.b32.xlu0 %v2948_v2, %s2882_s25 }
  0x35   : > { %768 = vrot.lane.b32.xlu1 %v2948_v2, %s2883_s26  ;;  %772 = vrot.lane.b32.xlu0 %v2946_v1, %s2883_s26 }
  0x39   : > { %863 = vrot.lane.b32.xlu1 %v2946_v1, %s2884_s27  ;;  %861 = vrot.lane.b32.xlu0 %v2953_v3, %s2884_s27 }
  0x3d   : > { %952 = vrot.lane.b32.xlu1 %v2953_v3, %s2885_s28  ;;  %859 = vrot.lane.b32.xlu0 %v2948_v2, %s2884_s27  ;;  %s2802_s27 = sshll.u32 %s3259_s12, 4 }
  0x41   : > { %950 = vrot.lane.b32.xlu1 %v2948_v2, %s2885_s28  ;;  %954 = vrot.lane.b32.xlu0 %v2946_v1, %s2885_s28 }
  0x45   : > { %1043 = vrot.lane.b32.xlu1 %v2953_v3, %s2886_s29  ;;  %1041 = vrot.lane.b32.xlu0 %v2948_v2, %s2886_s29 }
  0x49   : > { %1131 = vrot.lane.b32.xlu1 %v2953_v3, %s2887_s30  ;;  %1129 = vrot.lane.b32.xlu0 %v2948_v2, %s2887_s30  ;;  %s213_s30 = scalar_lea.vmem %s3253_s3, %s2802_s27 }
  0x4d   : > { %1219 = vrot.lane.b32.xlu1 %v2953_v3, %s2888_s4  ;;  %1217 = vrot.lane.b32.xlu0 %v2948_v2, %s2888_s4 }
  0x51   : > { %1543 = vrot.lane.b32.xlu1 %v2946_v1, %s2889_s5  ;;  %1541 = vrot.lane.b32.xlu0 %v2953_v3, %s2889_s5 }
  0x55   : > { %1632 = vrot.lane.b32.xlu1 %v2953_v3, %s2890_s6  ;;  %1539 = vrot.lane.b32.xlu0 %v2948_v2, %s2889_s5 }
  0x59   : > { %1630 = vrot.lane.b32.xlu1 %v2948_v2, %s2890_s6  ;;  %1634 = vrot.lane.b32.xlu0 %v2946_v1, %s2890_s6 }
  0x5d   : > { %1725 = vrot.lane.b32.xlu1 %v2946_v1, %s2891_s7  ;;  %1723 = vrot.lane.b32.xlu0 %v2953_v3, %s2891_s7 }
  0x61   : > { %1894 = vrot.lane.b32.xlu1 %v2948_v2, %s2892_s8  ;;  %1721 = vrot.lane.b32.xlu0 %v2948_v2, %s2891_s7 }
  0x65   : > { %1982 = vrot.lane.b32.xlu1 %v2948_v2, %s2893_s9  ;;  %1896 = vrot.lane.b32.xlu0 %v2953_v3, %s2892_s8 }
  0x69   : > { %2306 = vrot.lane.b32.xlu1 %v2953_v3, %s2894_s10  ;;  %1984 = vrot.lane.b32.xlu0 %v2953_v3, %s2893_s9 }
  0x6d   : > { %2304 = vrot.lane.b32.xlu1 %v2948_v2, %s2894_s10  ;;  %2308 = vrot.lane.b32.xlu0 %v2946_v1, %s2894_s10 }
  0x71   : > { %2399 = vrot.lane.b32.xlu1 %v2946_v1, %s2896_s11  ;;  %2397 = vrot.lane.b32.xlu0 %v2953_v3, %s2896_s11 }
  0x75   : > { %2488 = vrot.lane.b32.xlu1 %v2953_v3, %s2897_s16  ;;  %2395 = vrot.lane.b32.xlu0 %v2948_v2, %s2896_s11 }
  0x79   : > { %2486 = vrot.lane.b32.xlu1 %v2948_v2, %s2897_s16  ;;  %2490 = vrot.lane.b32.xlu0 %v2946_v1, %s2897_s16  ;;  %v2732_v1 = vld [vmem:[%s3251_s1 + $0x50] sm:$0xff] }
  0x7d   : > { %2589 = vperm.xlu0 %2850, %v2586_v5  }
  0x83   : > { %v234_v6 = vpop.permute.xlu0 %233  ;;  %v230_v7 = vpop.permute.xlu1 %229 }
  0x87   : > { %v319_v8 = vpop.permute.xlu1 %318  ;;  %v232_v9 = vpop.permute.xlu0 %231 }
  0x88   : > { %v237_v10 = vsel %vm235_vm1, %v232_v9, %v234_v6  ;;  %v236_v11 = vsel %vm235_vm1, %v230_v7, %v232_v9  ;;  %v2740_v7 = vld [vmem:[%s3251_s1 + $0x60] sm:$0xff]  ;;  %v2736_v9 = vld [vmem:[%s3251_s1 + $0x58] sm:$0xff]  ;;  %vm1727_vm1 = vcmask 375808  }
  0x89   : > { %2694 = vmatprep.subr.msk.mxu0 %vm242_vm2, %v237_v10 }
  0x8a   : > { %2695 = vmatpush1.msk.msra.mxu0 %vm242_vm2, %v236_v11 }
  0x8b   : > { %v407_v13 = vpop.permute.xlu1 %406  ;;  %v321_v14 = vpop.permute.xlu0 %320  ;;  %2696 = vmatmul.mubr.msk.f32.vlgmr.msra.gmra.mxu0 %vm238_vm3, %v2693_v12  ;;  %v2748_v12 = vld [vmem:[%s3251_s1 + $0x70] sm:$0xff] }
  0x8c   : > { %2697 = vmatprep.subr.msk.mxu1 %vm242_vm2, %v321_v14  ;;  %v323_v16 = vsel %vm219_vm0, %v319_v8, %v321_v14  ;;  %484 = vmatprep.mubr.f32.mxu0 %v2876_v0  ;;  %v2744_v14 = vld [vmem:[%s3251_s1 + $0x68] sm:$0xff] }
  0x8d   : > { %2698 = vmatpush1.msk.msra.mxu1 %vm242_vm2, %v323_v16 }
  0x8e   : > { %2699 = vmatmul.mubr.msk.f32.vlgmr.msra.gmra.mxu1 %vm238_vm3, %v223_v15 }
  0x8f   : > { %v405_v17 = vpop.permute.xlu1 %404  ;;  %v409_v18 = vpop.permute.xlu0 %408  ;;  %575 = vmatprep.mubr.f32.mxu1 %v2876_v0 }
  0x90   : > { %v411_v19 = vsel %vm410_vm4, %v405_v17, %v407_v13  ;;  %v412_v20 = vsel %vm410_vm4, %v407_v13, %v409_v18  ;;  %v2752_v18 = vld [vmem:[%s3251_s1 + $0x78] sm:$0xff]  ;;  %vm1898_vm4 = vcmask 1039360  }
  0x91   : > { %2701 = vmatprep.subr.msk.mxu0 %vm242_vm2, %v412_v20 }
  0x92   : > { %2702 = vmatpush1.msk.msra.mxu0 %vm242_vm2, %v411_v19 }
  0x93   : > { %v500_v22 = vpop.permute.xlu1 %499  ;;  %v498_v23 = vpop.permute.xlu0 %497  ;;  %2703 = vmatmul.mubr.msk.f32.vlgmr.msra.gmra.mxu0 %vm238_vm3, %v2700_v21 }
  0x94   : > { %v3032_v24 = vsel %vm501_vm5, %v498_v23, %v500_v22  ;;  %666 = vmatprep.mubr.f32.mxu0 %v2876_v0 }
  0x95   : > { %2705 = vmatprep.subr.msk.mxu1 %vm242_vm2, %v3032_v24 }
  0x97   : > { %v589_v25 = vpop.permute.xlu1 %588  ;;  %v496_v26 = vpop.permute.xlu0 %495 }
  0x98   : > { %v3040_v28 = vsel %vm501_vm5, %v496_v26, %v498_v23  ;;  %v2756_v23 = vld [vmem:[%s3251_s1 + $0x80] sm:$0xff]  ;;  %vm1986_vm5 = vcmask 1031168  }
  0x99   : > { %2706 = vmatpush1.msk.msra.mxu1 %vm242_vm2, %v3040_v28 }
  0x9a   : > { %2707 = vmatmul.mubr.msk.f32.vlgmr.msra.gmra.mxu1 %vm238_vm3, %v2704_v27 }
  0x9b   : > { %v587_v29 = vpop.permute.xlu1 %586  ;;  %v591_v30 = vpop.permute.xlu0 %590  ;;  %757 = vmatprep.mubr.f32.mxu1 %v2876_v0 }
  0x9c   : > { %v3046_v31 = vsel %vm592_vm6, %v587_v29, %v589_v25  ;;  %v3048_v32 = vsel %vm592_vm6, %v589_v25, %v591_v30  ;;  %v2764_v29 = vld [vmem:[%s3251_s1 + $0x90] sm:$0xff]  ;;  %vm2310_vm6 = vcmask 261120  }
  0x9d   : > { %2709 = vmatprep.subr.msk.mxu0 %vm242_vm2, %v3048_v32 }
  0x9e   : > { %2710 = vmatpush1.msk.msra.mxu0 %vm242_vm2, %v3046_v31 }
  0x9f   : > { %v682_v34 = vpop.permute.xlu1 %681  ;;  %v680_v35 = vpop.permute.xlu0 %679  ;;  %2711 = vmatmul.mubr.msk.f32.vlgmr.msra.gmra.mxu0 %vm238_vm3, %v2708_v33 }
  0xa0   : > { %v3058_v36 = vsel %vm683_vm7, %v680_v35, %v682_v34  ;;  %848 = vmatprep.mubr.f32.mxu0 %v2876_v0  ;;  %v2760_v34 = vld [vmem:[%s3251_s1 + $0x88] sm:$0xff] }
  0xa1   : > { %2713 = vmatprep.subr.msk.mxu1 %vm242_vm2, %v3058_v36 }
  0xa3   : > { %v771_v37 = vpop.permute.xlu1 %770  ;;  %v678_v38 = vpop.permute.xlu0 %677 }
  0xa4   : > { %v3066_v40 = vsel %vm683_vm7, %v678_v38, %v680_v35  ;;  %vm2401_vm7 = vcmask 252928  }
  0xa5   : > { %2714 = vmatpush1.msk.msra.mxu1 %vm242_vm2, %v3066_v40 }
  0xa6   : > { %2715 = vmatmul.mubr.msk.f32.vlgmr.msra.gmra.mxu1 %vm238_vm3, %v2712_v39 }
  0xa7   : > { %v769_v41 = vpop.permute.xlu1 %768  ;;  %v773_v42 = vpop.permute.xlu0 %772  ;;  %939 = vmatprep.mubr.f32.mxu1 %v2876_v0 }
  0xa8   : > { %v775_v43 = vsel %vm774_vm8, %v769_v41, %v771_v37  ;;  %v776_v44 = vsel %vm774_vm8, %v771_v37, %v773_v42  ;;  %v2768_v37 = vld [vmem:[%s3251_s1 + $0x98] sm:$0xff]  ;;  %v2772_v42 = vld [vmem:[%s3251_s1 + $0xa0] sm:$0xff]  ;;  %vm2492_vm8 = vcmask 244736  }
  0xa9   : > { %2717 = vmatprep.subr.msk.mxu0 %vm242_vm2, %v776_v44 }
  0xaa   : > { %2718 = vmatpush1.msk.msra.mxu0 %vm242_vm2, %v775_v43  ;;  %v2776_v43 = vld [vmem:[%s3251_s1 + $0xa8] sm:$0xff] }
  0xab   : > { %v864_v46 = vpop.permute.xlu1 %863  ;;  %v862_v47 = vpop.permute.xlu0 %861  ;;  %2719 = vmatmul.mubr.msk.f32.vlgmr.msra.gmra.mxu0 %vm238_vm3, %v2716_v45  ;;  %v2780_v45 = vld [vmem:[%s3251_s1 + $0xb0] sm:$0xff] }
  0xac   : > { %v867_v48 = vsel %vm865_vm9, %v862_v47, %v864_v46  ;;  %1030 = vmatprep.mubr.f32.mxu0 %v2876_v0 }
  0xad   : > { %2721 = vmatprep.subr.msk.mxu1 %vm242_vm2, %v867_v48 }
  0xaf   : > { %v953_v49 = vpop.permute.xlu1 %952  ;;  %v860_v50 = vpop.permute.xlu0 %859 }
  0xb0   : > { %v866_v52 = vsel %vm865_vm9, %v860_v50, %v862_v47 }
  0xb1   : > { %2722 = vmatpush1.msk.msra.mxu1 %vm242_vm2, %v866_v52 }
  0xb2   : > { %2723 = vmatmul.mubr.msk.f32.vlgmr.msra.gmra.mxu1 %vm238_vm3, %v2720_v51  ;;  %v2792_v51 = vld [vmem:[%s3251_s1 + $0xc8] sm:$0xff] }
  0xb3   : > { %v951_v53 = vpop.permute.xlu1 %950  ;;  %v955_v54 = vpop.permute.xlu0 %954  ;;  %1118 = vmatprep.mubr.f32.mxu1 %v2876_v0 }
  0xb4   : > { %v957_v55 = vsel %vm956_vm10, %v951_v53, %v953_v49  ;;  %v958_v56 = vsel %vm956_vm10, %v953_v49, %v955_v54 }
  0xb5   : > { %2725 = vmatprep.subr.msk.mxu0 %vm242_vm2, %v958_v56 }
  0xb6   : > { %2726 = vmatpush1.msk.msra.mxu0 %vm242_vm2, %v957_v55 }
  0xb7   : > { %v1044_v58 = vpop.permute.xlu1 %1043  ;;  %v1042_v59 = vpop.permute.xlu0 %1041  ;;  %2727 = vmatmul.mubr.msk.f32.vlgmr.msra.gmra.mxu0 %vm238_vm3, %v2724_v57  ;;  %v2796_v57 = vld [vmem:[%s3251_s1 + $0xd0] sm:$0xff] }
  0xb8   : > { %v1046_v61 = vsel %vm1045_vm11, %v1042_v59, %v1044_v58  ;;  %2729 = vmatprep.subr.msk.mxu1 %vm242_vm2, %v1044_v58  ;;  %1206 = vmatprep.mubr.f32.mxu0 %v2876_v0 }
  0xb9   : > { %2730 = vmatpush1.msk.msra.mxu1 %vm242_vm2, %v1046_v61 }
  0xba   : > { %2731 = vmatmul.mubr.msk.f32.vlgmr.msra.gmra.mxu1 %vm238_vm3, %v2728_v60 }
  0xbb   : > { %v1132_v62 = vpop.permute.xlu1 %1131  ;;  %v1130_v63 = vpop.permute.xlu0 %1129  ;;  %1294 = vmatprep.mubr.f32.mxu1 %v2876_v0 }
  0xbc   : > { %v1134_v4 = vsel %vm1133_vm12, %v1130_v63, %v1132_v62  ;;  %2733 = vmatprep.subr.msk.mxu0 %vm242_vm2, %v1132_v62 }
  0xbd   : > { %2734 = vmatpush1.msk.msra.mxu0 %vm242_vm2, %v1134_v4 }
  0xbe   : > { %2735 = vmatmul.mubr.msk.f32.vlgmr.msra.gmra.mxu0 %vm238_vm3, %v2732_v1  ;;  %2741 = vmatprep.subr.msk.mxu0 %vm242_vm2, %v3032_v24 }
  0xbf   : > { %v1220_v5 = vpop.permute.xlu1 %1219  ;;  %2742 = vmatpush1.msk.msra.mxu0 %vm242_vm2, %v3040_v28  ;;  %v1218_v6 = vpop.permute.xlu0 %1217  ;;  %1372 = vmatprep.mubr.f32.mxu0 %v2876_v0 }
  0xc0   : > { %v1222_v8 = vsel %vm1221_vm13, %v1218_v6, %v1220_v5  ;;  %2737 = vmatprep.subr.msk.mxu1 %vm242_vm2, %v1220_v5  ;;  %2749 = vmatprep.subr.msk.mxu0 %vm242_vm2, %v3058_v36 }
  0xc1   : > { %2738 = vmatpush1.msk.msra.mxu1 %vm242_vm2, %v1222_v8 }
  0xc2   : > { %2743 = vmatmul.mubr.msk.f32.vlgmr.msra.gmra.mxu0 %vm238_vm3, %v2740_v7  ;;  %2745 = vmatprep.subr.msk.mxu1 %vm242_vm2, %v3048_v32 }
  0xc3   : > { %2750 = vmatpush1.msk.msra.mxu0 %vm242_vm2, %v3066_v40  ;;  %v1544_v10 = vpop.permute.xlu1 %1543  ;;  %2739 = vmatmul.mubr.msk.f32.vlgmr.msra.gmra.mxu1 %vm238_vm3, %v2736_v9  ;;  %v1542_v11 = vpop.permute.xlu0 %1541 }
  0xc4   : > { %2746 = vmatpush1.msk.msra.mxu1 %vm242_vm2, %v3046_v31  ;;  %v1547_v13 = vsel %vm1545_vm14, %v1542_v11, %v1544_v10  ;;  %1450 = vmatprep.mubr.f32.mxu1 %v2876_v0 }
  0xc5   : > { %2753 = vmatprep.subr.msk.mxu1 %vm242_vm2, %v1547_v13  ;;  %1528 = vmatprep.mubr.f32.mxu0 %v2876_v0 }
  0xc6   : > { %2751 = vmatmul.mubr.msk.f32.vlgmr.msra.gmra.mxu0 %vm238_vm3, %v2748_v12 }
  0xc7   : > { %v1633_v15 = vpop.permute.xlu1 %1632  ;;  %v1540_v16 = vpop.permute.xlu0 %1539  ;;  %2747 = vmatmul.mubr.msk.f32.vlgmr.msra.gmra.mxu1 %vm238_vm3, %v2744_v14  ;;  %1710 = vmatprep.mubr.f32.mxu0 %v2876_v0 }
  0xc8   : > { %v1546_v17 = vsel %vm1545_vm14, %v1540_v16, %v1542_v11  ;;  %1619 = vmatprep.mubr.f32.mxu1 %v2876_v0 }
  0xc9   : > { %2754 = vmatpush1.msk.msra.mxu1 %vm242_vm2, %v1546_v17 }
  0xcb   : > { %v1631_v19 = vpop.permute.xlu1 %1630  ;;  %v1635_v20 = vpop.permute.xlu0 %1634  ;;  %2755 = vmatmul.mubr.msk.f32.vlgmr.msra.gmra.mxu1 %vm238_vm3, %v2752_v18 }
  0xcc   : > { %v1637_v21 = vsel %vm1636_vm15, %v1631_v19, %v1633_v15  ;;  %v1638_v22 = vsel %vm1636_vm15, %v1633_v15, %v1635_v20  ;;  %1801 = vmatprep.mubr.f32.mxu1 %v2876_v0 }
  0xcd   : > { %2757 = vmatprep.subr.msk.mxu0 %vm242_vm2, %v1638_v22 }
  0xce   : > { %2758 = vmatpush1.msk.msra.mxu0 %vm242_vm2, %v1637_v21 }
  0xcf   : > { %v1726_v25 = vpop.permute.xlu1 %1725  ;;  %v1724_v26 = vpop.permute.xlu0 %1723  ;;  %2759 = vmatmul.mubr.msk.f32.vlgmr.msra.gmra.mxu0 %vm238_vm3, %v2756_v23  ;;  %2765 = vmatprep.subr.msk.mxu0 %vm242_vm2, %v2953_v3 }
  0xd0   : > { %v1729_v27 = vsel %vm1727_vm1, %v1724_v26, %v1726_v25  ;;  %2766 = vmatpush1.msk.msra.mxu0 %vm242_vm2, %v2948_v2  ;;  %1883 = vmatprep.mubr.f32.mxu0 %v2876_v0 }
  0xd1   : > { %2761 = vmatprep.subr.msk.mxu1 %vm242_vm2, %v1729_v27 }
  0xd3   : > { %v1895_v30 = vpop.permute.xlu1 %1894  ;;  %v1722_v33 = vpop.permute.xlu0 %1721  ;;  %2767 = vmatmul.mubr.msk.f32.vlgmr.msra.gmra.mxu0 %vm238_vm3, %v2764_v29 }
  0xd4   : > { %v1728_v3 = vsel %vm1727_vm1, %v1722_v33, %v1724_v26  ;;  %2059 = vmatprep.mubr.f32.mxu0 %v2876_v0 }
  0xd5   : > { %2762 = vmatpush1.msk.msra.mxu1 %vm242_vm2, %v1728_v3 }
  0xd6   : > { %2763 = vmatmul.mubr.msk.f32.vlgmr.msra.gmra.mxu1 %vm238_vm3, %v2760_v34 }
  0xd7   : > { %v1983_v2 = vpop.permute.xlu1 %1982  ;;  %v1897_v35 = vpop.permute.xlu0 %1896  ;;  %1971 = vmatprep.mubr.f32.mxu1 %v2876_v0 }
  0xd8   : > { %v1899_v38 = vsel %vm1898_vm4, %v1895_v30, %v1897_v35  ;;  %2769 = vmatprep.subr.msk.mxu1 %vm242_vm2, %v1897_v35 }
  0xd9   : > { %2770 = vmatpush1.msk.msra.mxu1 %vm242_vm2, %v1899_v38 }
  0xda   : > { %2771 = vmatmul.mubr.msk.f32.vlgmr.msra.gmra.mxu1 %vm238_vm3, %v2768_v37  ;;  %2777 = vmatprep.subr.msk.mxu1 %vm242_vm2, %v3032_v24 }
  0xdb   : > { %v2307_v39 = vpop.permute.xlu1 %2306  ;;  %2778 = vmatpush1.msk.msra.mxu1 %vm242_vm2, %v3040_v28  ;;  %v1985_v41 = vpop.permute.xlu0 %1984  ;;  %2137 = vmatprep.mubr.f32.mxu1 %v2876_v0 }
  0xdc   : > { %v1987_v44 = vsel %vm1986_vm5, %v1983_v2, %v1985_v41  ;;  %2773 = vmatprep.subr.msk.mxu0 %vm242_vm2, %v1985_v41  ;;  %2785 = vmatprep.subr.msk.mxu1 %vm242_vm2, %v3058_v36  ;;  %v2784_v36 = vld [vmem:[%s3251_s1 + $0xb8] sm:$0xff] }
  0xdd   : > { %2774 = vmatpush1.msk.msra.mxu0 %vm242_vm2, %v1987_v44 }
  0xde   : > { %2775 = vmatmul.mubr.msk.f32.vlgmr.msra.gmra.mxu0 %vm238_vm3, %v2772_v42  ;;  %2779 = vmatmul.mubr.msk.f32.vlgmr.msra.gmra.mxu1 %vm238_vm3, %v2776_v43 }
  0xdf   : > { %2781 = vmatprep.subr.msk.mxu0 %vm242_vm2, %v3048_v32  ;;  %2786 = vmatpush1.msk.msra.mxu1 %vm242_vm2, %v3066_v40  ;;  %v2305_v24 = vpop.permute.xlu1 %2304  ;;  %v2309_v28 = vpop.permute.xlu0 %2308 }
  0xe0   : > { %v2311_v46 = vsel %vm2310_vm6, %v2305_v24, %v2307_v39  ;;  %2782 = vmatpush1.msk.msra.mxu0 %vm242_vm2, %v3046_v31  ;;  %v2312_v47 = vsel %vm2310_vm6, %v2307_v39, %v2309_v28  ;;  %2215 = vmatprep.mubr.f32.mxu0 %v2876_v0  ;;  %v2788_v31 = vld [vmem:[%s3251_s1 + $0xc0] sm:$0xff] }
  0xe1   : > { %2789 = vmatprep.subr.msk.mxu0 %vm242_vm2, %v2312_v47  ;;  %2293 = vmatprep.mubr.f32.mxu1 %v2876_v0 }
  0xe2   : > { %2783 = vmatmul.mubr.msk.f32.vlgmr.msra.gmra.mxu0 %vm238_vm3, %v2780_v45  ;;  %2787 = vmatmul.mubr.msk.f32.vlgmr.msra.gmra.mxu1 %vm238_vm3, %v2784_v36 }
  0xe3   : > { %2790 = vmatpush1.msk.msra.mxu0 %vm242_vm2, %v2311_v46  ;;  %v2400_v32 = vpop.permute.xlu1 %2399  ;;  %v2398_v40 = vpop.permute.xlu0 %2397  ;;  %2384 = vmatprep.mubr.f32.mxu0 %v2876_v0 }
  0xe4   : > { %v2403_v48 = vsel %vm2401_vm7, %v2398_v40, %v2400_v32  ;;  %2475 = vmatprep.mubr.f32.mxu1 %v2876_v0 }
  0xe5   : > { %2793 = vmatprep.subr.msk.mxu1 %vm242_vm2, %v2403_v48 }
  0xe6   : > { %2791 = vmatmul.mubr.msk.f32.vlgmr.msra.gmra.mxu0 %vm238_vm3, %v2788_v31 }
  0xe7   : > { %v2489_v49 = vpop.permute.xlu1 %2488  ;;  %v2396_v50 = vpop.permute.xlu0 %2395  ;;  %2566 = vmatprep.mubr.f32.mxu0 %v2876_v0 }
  0xe8   : > { %v2402_v52 = vsel %vm2401_vm7, %v2396_v50, %v2398_v40 }
  0xe9   : > { %2794 = vmatpush1.msk.msra.mxu1 %vm242_vm2, %v2402_v52 }
  0xea   : > { %2795 = vmatmul.mubr.msk.f32.vlgmr.msra.gmra.mxu1 %vm238_vm3, %v2792_v51 }
  0xeb   : > { %v2487_v53 = vpop.permute.xlu1 %2486  ;;  %v2491_v54 = vpop.permute.xlu0 %2490 }
  0xec   : > { %v2493_v55 = vsel %vm2492_vm8, %v2487_v53, %v2489_v49  ;;  %v2494_v56 = vsel %vm2492_vm8, %v2489_v49, %v2491_v54 }
  0xed   : > { %2797 = vmatprep.subr.msk.mxu0 %vm242_vm2, %v2494_v56 }
  0xee   : > { %2798 = vmatpush1.msk.msra.mxu0 %vm242_vm2, %v2493_v55 }
  0xef   : > { %2799 = vmatmul.mubr.msk.f32.vlgmr.msra.gmra.mxu0 %vm238_vm3, %v2796_v57 }
 0x14b   : > { %v313_v0 = vpop.f32.mrf.mxu0 }
 0x14d   : > { %v315_v58 = vpop.f32.mrf.mxu0 }
 0x14e   : > { %v397_v59 = vpop.f32.mrf.mxu1 }
 0x14f   : > { %v398_v62 = vadd.f32 %v397_v59, %v313_v0 }
 0x150   : > { %v399_v60 = vpop.f32.mrf.mxu1 }
 0x151   : > { %v400_v63 = vadd.f32 %v399_v60, %v315_v58 }
 0x153   : > { %v486_v61 = vpop.f32.mrf.mxu0 }
 0x154   : > { %v491_v5 = vadd.f32 %v486_v61, %v398_v62 }
 0x155   : > { %v488_v1 = vpop.f32.mrf.mxu0 }
 0x156   : > { %v492_v6 = vadd.f32 %v488_v1, %v400_v63 }
 0x15a   : > { %v577_v4 = vpop.f32.mrf.mxu1 }
 0x15b   : > { %v582_v9 = vadd.f32 %v577_v4, %v491_v5 }
 0x15c   : > { %v579_v7 = vpop.f32.mrf.mxu1 }
 0x15d   : > { %v583_v10 = vadd.f32 %v579_v7, %v492_v6 }
 0x15f   : > { %v668_v8 = vpop.f32.mrf.mxu0 }
 0x160   : > { %v673_v13 = vadd.f32 %v668_v8, %v582_v9 }
 0x161   : > { %v670_v11 = vpop.f32.mrf.mxu0 }
 0x162   : > { %v674_v14 = vadd.f32 %v670_v11, %v583_v10 }
 0x166   : > { %v759_v12 = vpop.f32.mrf.mxu1 }
 0x167   : > { %v764_v17 = vadd.f32 %v759_v12, %v673_v13 }
 0x168   : > { %v761_v15 = vpop.f32.mrf.mxu1 }
 0x169   : > { %v765_v18 = vadd.f32 %v761_v15, %v674_v14 }
 0x16b   : > { %v850_v16 = vpop.f32.mrf.mxu0 }
 0x16c   : > { %v855_v20 = vadd.f32 %v850_v16, %v764_v17 }
 0x16d   : > { %v852_v19 = vpop.f32.mrf.mxu0 }
 0x16e   : > { %v856_v21 = vadd.f32 %v852_v19, %v765_v18 }
 0x172   : > { %v941_v22 = vpop.f32.mrf.mxu1 }
 0x173   : > { %v946_v23 = vadd.f32 %v941_v22, %v855_v20 }
 0x174   : > { %v943_v25 = vpop.f32.mrf.mxu1 }
 0x175   : > { %v947_v26 = vadd.f32 %v943_v25, %v856_v21 }
 0x177   : > { %v1032_v27 = vpop.f32.mrf.mxu0 }
 0x178   : > { %v1037_v29 = vadd.f32 %v1032_v27, %v946_v23 }
 0x179   : > { %v1034_v30 = vpop.f32.mrf.mxu0 }
 0x17a   : > { %v1038_v33 = vadd.f32 %v1034_v30, %v947_v26  ;;  %v1120_v34 = vpop.f32.mrf.mxu1 }
 0x17b   : > { %v1125_v3 = vadd.f32 %v1120_v34, %v1037_v29 }
 0x17c   : > { %v1122_v2 = vpop.f32.mrf.mxu1 }
 0x17d   : > { %v1126_v35 = vadd.f32 %v1122_v2, %v1038_v33 }
 0x17e   : > { %v1208_v37 = vpop.f32.mrf.mxu0 }
 0x17f   : > { %v1213_v38 = vadd.f32 %v1208_v37, %v1125_v3 }
 0x180   : > { %v1210_v39 = vpop.f32.mrf.mxu0 }
 0x181   : > { %v1214_v41 = vadd.f32 %v1210_v39, %v1126_v35 }
 0x182   : > { %v1374_v42 = vpop.f32.mrf.mxu0 }
 0x183   : > { %v1296_v43 = vpop.f32.mrf.mxu1 }
 0x184   : > { %v1301_v44 = vadd.f32 %v1296_v43, %v1213_v38  ;;  %v1376_v24 = vpop.f32.mrf.mxu0 }
 0x185   : > { %v1298_v28 = vpop.f32.mrf.mxu1 }
 0x186   : > { %v1302_v45 = vadd.f32 %v1298_v28, %v1214_v41  ;;  %v1379_v36 = vadd.f32 %v1374_v42, %v1301_v44  ;;  %v1530_v46 = vpop.f32.mrf.mxu0  ;;  %v2576_v41 = vld [vmem:[#allocation2 + $0x8] sm:$0xff]  ;;  %v2590_v42 = vpop.permute.xlu0 %2589 }
 0x187   : > { %v1452_v47 = vpop.f32.mrf.mxu1 }
 0x188   : > { %v1380_v32 = vadd.f32 %v1376_v24, %v1302_v45  ;;  %v1457_v40 = vadd.f32 %v1452_v47, %v1379_v36  ;;  %v1532_v49 = vpop.f32.mrf.mxu0 }
 0x189   : > { %v1454_v31 = vpop.f32.mrf.mxu1 }
 0x18a   : > { %v1458_v48 = vadd.f32 %v1454_v31, %v1380_v32  ;;  %v1535_v50 = vadd.f32 %v1530_v46, %v1457_v40 }
 0x18b   : > { %v1621_v51 = vpop.f32.mrf.mxu1 }
 0x18c   : > { %v1536_v52 = vadd.f32 %v1532_v49, %v1458_v48  ;;  %v1626_v54 = vadd.f32 %v1621_v51, %v1535_v50 }
 0x18d   : > { %v1623_v53 = vpop.f32.mrf.mxu1 }
 0x18e   : > { %v1627_v56 = vadd.f32 %v1623_v53, %v1536_v52 }
 0x18f   : > { %v1712_v55 = vpop.f32.mrf.mxu0 }
 0x190   : > { %v1717_v0 = vadd.f32 %v1712_v55, %v1626_v54 }
 0x191   : > { %v1714_v57 = vpop.f32.mrf.mxu0 }
 0x192   : > { %v1718_v59 = vadd.f32 %v1714_v57, %v1627_v56 }
 0x193   : > { %v1885_v58 = vpop.f32.mrf.mxu0 }
 0x195   : > { %v1887_v63 = vpop.f32.mrf.mxu0 }
 0x196   : > { %v1803_v60 = vpop.f32.mrf.mxu1 }
 0x197   : > { %v1808_v61 = vadd.f32 %v1803_v60, %v1717_v0 }
 0x198   : > { %v1805_v62 = vpop.f32.mrf.mxu1 }
 0x199   : > { %v1809_v1 = vadd.f32 %v1805_v62, %v1718_v59  ;;  %v1890_v4 = vadd.f32 %v1885_v58, %v1808_v61 }
 0x19a   : > { %v1973_v5 = vpop.f32.mrf.mxu1 }
 0x19b   : > { %v1891_v6 = vadd.f32 %v1887_v63, %v1809_v1  ;;  %v1978_v7 = vadd.f32 %v1973_v5, %v1890_v4 }
 0x19c   : > { %v1975_v8 = vpop.f32.mrf.mxu1 }
 0x19d   : > { %v1979_v9 = vadd.f32 %v1975_v8, %v1891_v6 }
 0x19e   : > { %v2061_v10 = vpop.f32.mrf.mxu0  ;;  %v2139_v11 = vpop.f32.mrf.mxu1 }
 0x19f   : > { %v2066_v12 = vadd.f32 %v2061_v10, %v1978_v7 }
 0x1a0   : > { %v2063_v13 = vpop.f32.mrf.mxu0  ;;  %v2141_v14 = vpop.f32.mrf.mxu1 }
 0x1a1   : > { %v2067_v15 = vadd.f32 %v2063_v13, %v1979_v9  ;;  %v2144_v16 = vadd.f32 %v2139_v11, %v2066_v12 }
 0x1a2   : > { %v2217_v17 = vpop.f32.mrf.mxu0  ;;  %v2295_v18 = vpop.f32.mrf.mxu1 }
 0x1a3   : > { %v2145_v19 = vadd.f32 %v2141_v14, %v2067_v15  ;;  %v2222_v20 = vadd.f32 %v2217_v17, %v2144_v16 }
 0x1a4   : > { %v2219_v21 = vpop.f32.mrf.mxu0  ;;  %v2297_v23 = vpop.f32.mrf.mxu1 }
 0x1a5   : > { %v2223_v22 = vadd.f32 %v2219_v21, %v2145_v19  ;;  %v2300_v25 = vadd.f32 %v2295_v18, %v2222_v20 }
 0x1a6   : > { %v2386_v26 = vpop.f32.mrf.mxu0 }
 0x1a7   : > { %v2301_v27 = vadd.f32 %v2297_v23, %v2223_v22  ;;  %v2391_v30 = vadd.f32 %v2386_v26, %v2300_v25 }
 0x1a8   : > { %v2388_v29 = vpop.f32.mrf.mxu0 }
 0x1a9   : > { %v2392_v34 = vadd.f32 %v2388_v29, %v2301_v27 }
 0x1aa   : > { %v2477_v33 = vpop.f32.mrf.mxu1 }
 0x1ab   : > { %v2482_v2 = vadd.f32 %v2477_v33, %v2391_v30 }
 0x1ac   : > { %v2479_v3 = vpop.f32.mrf.mxu1 }
 0x1ad   : > { %v2483_v37 = vadd.f32 %v2479_v3, %v2392_v34 }
 0x1af   : > { %v2568_v35 = vpop.f32.mrf.mxu0 }
 0x1b0   : > { %v2573_v38 = vadd.f32 %v2568_v35, %v2482_v2 }
 0x1b1   : > { %v2570_v39 = vpop.f32.mrf.mxu0 }
 0x1b2   : > { %v2574_v43 = vadd.f32 %v2570_v39, %v2483_v37  ;;  %v2592_v24 = vadd.f32 %v2590_v42, %v2573_v38 }
 0x1b4   : > { %v2578_v44 = vadd.f32 %v2576_v41, %v2574_v43  ;;  %2594 = vst [vmem:[%s213_s30] sm:$0xff] %v2592_v24 }
 0x1b6   : > { %2580 = vst.msk [vmem:[#allocation2 + $0x8] sm:$0xff] %vm219_vm0, %v2578_v44 }
 0x1bd   : > { %v2585_v28 = vld [vmem:[#allocation2 + $0x8] sm:$0xff] }
 0x1be   : > { %v2593_v45 = vadd.f32 %v2590_v42, %v2585_v28 }
 0x1c0   : > { %2595 = vst.msk [vmem:[%s213_s30 + $0x8] sm:$0xff] %vm219_vm0, %v2593_v45 }
 0x1c1 PF: > { %s13_s14 = sadd.s32 1, %s2874_s14   ;;  %s3254_s12 = smov %s2870_s13 }
 0x1c2   : > { %p10_p5 = scmp.ge.s32.totalorder %s13_s14, 4   ;;  %s3255_s13 = smov %s3257_s15 }
 0x1c4   :  { %12 = sbr.rel (!%p10_p5) target bundleno = 2 (0x2), region = 99 }

</bundles_post_ra>
